<compile_context>
chip_gen: v6e
topology: v6e:2x2x1
jax: 0.10.0
libtpu: 0.0.40
codegen_flags: <defaults>
</compile_context>

<pallas_src>
import functools

import jax
import jax.numpy as jnp
from jax import lax
from jax.experimental import pallas as pl
from jax.experimental.pallas import tpu as pltpu

_LANE = 128
_SUBLANE = 8

# Fast-path thresholds: conservative so the resident table + double-buffered
# blocks fit the default scoped-VMEM limit on every generation (v5e 16 MiB,
# v6e 32 MiB, v7x 32 MiB default / 64 MiB physical per TensorCore).
_FAST_PATH_MAX_V = 2048
_FAST_PATH_MAX_TABLE_BYTES = 4 * 1024 * 1024

# Gather path: target ~2 MiB output blocks, cap tokens per grid step.
_TARGET_BLOCK_BYTES = 2 * 1024 * 1024
_MAX_TB_GATHER = 1024


def _round_up(x: int, m: int) -> int:
    return ((x + m - 1) // m) * m


def _compiler_params(vmem_needed_bytes: int) -> pltpu.CompilerParams:
    # 32 MiB is a safe explicit scoped limit on every generation; never ask
    # for more than ~48 MiB so v7x (64 MiB physical per TC) is never exceeded.
    limit = int(min(48 << 20, max(32 << 20, vmem_needed_bytes)))
    return pltpu.CompilerParams(
        dimension_semantics=("parallel",),   # shards grid steps across TCs (v7x)
        vmem_limit_bytes=limit)


# ---------------------------------------------------------------------------
# Fast path: VMEM-resident table, one-hot x table MXU matmul.
# ---------------------------------------------------------------------------
def _embedding_onehot_kernel(ids_ref, w_ref, o_ref):
    """ids_ref: VMEM (tb, 1) int32; w_ref: VMEM (V, D) (grid-resident);
    o_ref: VMEM (tb, D)."""
    tb = ids_ref.shape[0]
    v = w_ref.shape[0]
    iota = lax.broadcasted_iota(jnp.int32, (tb, v), 1)
    onehot = (iota == ids_ref[...]).astype(w_ref.dtype)
    # HIGHEST precision: f32 weights are split exactly across MXU passes, so a
    # one-hot selection reproduces the table rows (effectively bit-exact).
    o_ref[...] = jnp.dot(
        onehot, w_ref[...],
        preferred_element_type=jnp.float32,
        precision=lax.Precision.HIGHEST).astype(o_ref.dtype)


def _lookup_small_table(flat_ids: jax.Array, weight: jax.Array,
                        table_vmem_bytes: int) -> jax.Array:
    n = flat_ids.shape[0]
    V, D = weight.shape
    itemsize = jnp.dtype(weight.dtype).itemsize

    # Tokens per step: bounded by the (tb, V) one-hot intermediate (~1 MiB f32)
    # and the (tb, D) output block (~2 MiB); multiple of 8 sublanes.
    tb = min(512,
             max(8, (1 << 20) // max(1, V * 4)),
             max(8, _TARGET_BLOCK_BYTES // max(1, D * itemsize)))
    tb = max(8, (tb // 8) * 8)
    tb = min(tb, _round_up(n, 8))
    n_padded = _round_up(n, tb)

    ids = jnp.pad(flat_ids, (0, n_padded - n)).reshape(n_padded, 1)

    d_lanes = _round_up(D, _LANE)
    vmem_needed = (table_vmem_bytes            # resident table
                   + 4 * tb * d_lanes * itemsize  # double-buffered out + margin
                   + 4 * tb * V                   # one-hot temporaries
                   + (4 << 20))

    return pl.pallas_call(
        _embedding_onehot_kernel,
        out_shape=jax.ShapeDtypeStruct((n_padded, D), weight.dtype),
        grid_spec=pltpu.PrefetchScalarGridSpec(
            num_scalar_prefetch=0,
            grid=(n_padded // tb,),
            in_specs=[
                pl.BlockSpec((tb, 1), lambda i: (i, 0)),
                pl.BlockSpec((V, D), lambda i: (0, 0)),   # table resident in VMEM
            ],
            out_specs=pl.BlockSpec((tb, D), lambda i: (i, 0)),
        ),
        compiler_params=_compiler_params(vmem_needed),
        cost_estimate=pl.CostEstimate(
            flops=2 * n_padded * V * D, transcendentals=0,
            bytes_accessed=(V * D + 2 * n_padded * D) * itemsize),
    )(ids, weight)


# ---------------------------------------------------------------------------
# Large-vocab path: HBM-resident table, per-row DMA gather.
# ---------------------------------------------------------------------------
def _embedding_gather_kernel(tb, ids_ref, w_hbm, o_ref, sem):
    """ids_ref: SMEM (n_padded,) int32 (scalar-prefetched token ids)
    w_hbm  : HBM  (V, D)   embedding table (never staged in VMEM)
    o_ref  : VMEM (tb, D)  output block for this grid step
    sem    : DMA semaphore (1,)
    """
    base = pl.program_id(0) * tb

    # Issue tb row-gather DMAs, 8 per scalar-loop iteration (statically
    # unrolled inner bodies let address calc and descriptor pushes co-issue;
    # descriptor issue rate is the binding resource for small rows).
    def _issue8(g, carry):
        t0 = pl.multiple_of(g * 8, 8)
        for u in range(8):                    # static unroll by 8
            t = t0 + u
            tok = ids_ref[base + t]
            pltpu.make_async_copy(w_hbm.at[tok], o_ref.at[t], sem.at[0]).start()
        return carry
    lax.fori_loop(0, tb // 8, _issue8, 0)

    # Aggregate drain: DMA semaphores count bytes, and the tb row copies above
    # transfer exactly one (tb, D) block worth of bytes, so a single
    # block-sized wait drains them all (one sync-flag poll instead of tb).
    # INVARIANT: every copy started above is exactly one full (D,) row.
    pltpu.make_async_copy(o_ref, o_ref, sem.at[0]).wait()


def _lookup_gather(flat_ids: jax.Array, weight: jax.Array) -> jax.Array:
    n = flat_ids.shape[0]
    V, D = weight.shape
    itemsize = jnp.dtype(weight.dtype).itemsize
    row_bytes = D * itemsize

    # Tokens per grid step: target ~2 MiB output blocks while keeping the
    # double-buffered block well under the v7x per-core VMEM budget.
    tb = max(8, min(_MAX_TB_GATHER, _TARGET_BLOCK_BYTES // max(1, row_bytes)))
    tb = (tb // 8) * 8
    tb = min(tb, _round_up(n, 8))
    n_padded = _round_up(n, tb)

    # Padded tail ids gather row 0 and are sliced off by the caller (needed so
    # the aggregate byte-count wait above stays exact).
    ids = jnp.pad(flat_ids, (0, n_padded - n))
    # TODO(synk): beyond ~250k tokens the 1-D SMEM scalar-prefetch buffer
    # (next_pow2(4N) bytes) overflows SMEM; chunk the call or stage ids per
    # block in SMEM instead of prefetching them all.

    d_lanes = _round_up(D, _LANE)
    vmem_needed = 4 * tb * d_lanes * itemsize + (4 << 20)

    return pl.pallas_call(
        functools.partial(_embedding_gather_kernel, tb),
        out_shape=jax.ShapeDtypeStruct((n_padded, D), weight.dtype),
        grid_spec=pltpu.PrefetchScalarGridSpec(
            num_scalar_prefetch=1,                          # ids -> SMEM
            grid=(n_padded // tb,),
            in_specs=[pl.BlockSpec(memory_space=pl.ANY)],   # table stays in HBM
            out_specs=pl.BlockSpec((tb, D), lambda i, ids: (i, 0)),
            scratch_shapes=[pltpu.SemaphoreType.DMA((1,))],
        ),
        compiler_params=_compiler_params(vmem_needed),
        cost_estimate=pl.CostEstimate(
            flops=0, transcendentals=0,
            bytes_accessed=2 * n_padded * D * itemsize),    # pure mem traffic
    )(ids, weight)


# ---------------------------------------------------------------------------
# Public wrapper: Pallas equivalent of `weight[token_ids]`.
# ---------------------------------------------------------------------------
def embedding_lookup(token_ids: jax.Array, weight: jax.Array,
                     *, force_gather: bool = False) -> jax.Array:
    V, D = weight.shape
    orig_shape = token_ids.shape

    flat = token_ids.reshape(-1).astype(jnp.int32)
    n = flat.shape[0]
    if n == 0:                                   # empty input: nothing to do
        return jnp.zeros((*orig_shape, D), weight.dtype)

    # PyTorch errors on out-of-range ids; we clamp defensively instead (an
    # out-of-range id would otherwise fault the gather DMA). Documented
    # divergence.
    flat = jnp.clip(flat, 0, V - 1)

    itemsize = jnp.dtype(weight.dtype).itemsize
    table_vmem_bytes = _round_up(V, _SUBLANE) * _round_up(D, _LANE) * itemsize
    use_fast = (not force_gather
                and V <= _FAST_PATH_MAX_V
                and table_vmem_bytes <= _FAST_PATH_MAX_TABLE_BYTES)

    if use_fast:
        out = _lookup_small_table(flat, weight, table_vmem_bytes)
    else:
        out = _lookup_gather(flat, weight)

    return out[:n].reshape(*orig_shape, D)


if __name__ == "__main__":
    key = jax.random.PRNGKey(0)
    k_w, k_ids, k_w2, k_ids2 = jax.random.split(key, 4)

    # --- Small shapes consistent with the module (vocab=64, d_model=32):
    # exercises the VMEM-resident one-hot fast path.
    num_embeddings, embedding_dim = 64, 32
    batch, seq = 2, 8

    # nn.init.trunc_normal_(weight, a=-3, b=3) equivalent (mean=0, std=1).
    weight = jax.random.truncated_normal(
        k_w, -3.0, 3.0, (num_embeddings, embedding_dim), dtype=jnp.float32)
    token_ids = jax.random.randint(
        k_ids, (batch, seq), 0, num_embeddings, dtype=jnp.int32)

    out = jax.block_until_ready(embedding_lookup(token_ids, weight))
    ref = weight[token_ids]
    assert out.shape == (batch, seq, embedding_dim), out.shape
    assert out.dtype == weight.dtype, out.dtype
    assert jnp.allclose(out, ref, rtol=1e-6, atol=1e-6), "fast path mismatch"

    # --- Larger-vocab case: exercises the HBM-resident DMA-gather path
    # (forced, since this table would otherwise also fit the fast path).
    V2, D2 = 512, 256
    weight2 = jax.random.truncated_normal(
        k_w2, -3.0, 3.0, (V2, D2), dtype=jnp.float32)
    token_ids2 = jax.random.randint(
        k_ids2, (batch, seq), 0, V2, dtype=jnp.int32)

    out2 = jax.block_until_ready(
        embedding_lookup(token_ids2, weight2, force_gather=True))
    ref2 = weight2[token_ids2]
    assert out2.shape == (batch, seq, D2), out2.shape
    assert jnp.array_equal(out2, ref2), "gather path mismatch"

    print("KERNEL_OK")
</pallas_src>

<mosaic_0001>
module attributes {stable_mosaic.version = 11 : i64} {
  func.func @_embedding_onehot_kernel(%arg0: i32, %arg1: memref<16x1xi32, #tpu.memory_space<vmem>>, %arg2: memref<64x32xf32, #tpu.memory_space<vmem>>, %arg3: memref<16x32xf32, #tpu.memory_space<vmem>>) attributes {dimension_semantics = [#tpu.dimension_semantics<parallel>], iteration_bounds = array<i64: 1>, scalar_prefetch = 0 : i64, scratch_operands = 0 : i64, tpu.core_type = #tpu.core_type<tc>, window_params = [{transform_indices = @transform_0, window_bounds = array<i64: 16, 1>}, {pipeline_mode = #tpu.pipeline_mode<synchronous>, transform_indices = @transform_1, window_bounds = array<i64: 64, 32>}, {transform_indices = @transform_2, window_bounds = array<i64: 16, 32>}]} {
    %0 = tpu.iota {dimensions = array<i32: 1>} : vector<16x64xi32>
    %c0 = arith.constant 0 : index
    %c0_0 = arith.constant 0 : index
    %1 = vector.load %arg1[%c0, %c0_0] : memref<16x1xi32, #tpu.memory_space<vmem>>, vector<16x1xi32>
    %2 = vector.broadcast %1 : vector<16x1xi32> to vector<16x64xi32>
    %3 = arith.cmpi eq, %0, %2 : vector<16x64xi32>
    %4 = arith.extui %3 : vector<16x64xi1> to vector<16x64xi32>
    %5 = arith.sitofp %4 : vector<16x64xi32> to vector<16x64xf32>
    %c0_1 = arith.constant 0 : index
    %c0_2 = arith.constant 0 : index
    %6 = vector.load %arg2[%c0_1, %c0_2] : memref<64x32xf32, #tpu.memory_space<vmem>>, vector<64x32xf32>
    %cst = arith.constant dense<0.000000e+00> : vector<16x32xf32>
    %7 = tpu.matmul %5, %6, %cst {dimension_numbers = #tpu.dot_dimension_numbers<[1], [0], [0], [1], [0, 0, 1, 1], [], []>, precision = #tpu.contract_precision<fp32>} : vector<16x64xf32>, vector<64x32xf32>, vector<16x32xf32> -> vector<16x32xf32>
    %c0_3 = arith.constant 0 : index
    %c0_4 = arith.constant 0 : index
    %8 = vector.load %arg3[%c0_3, %c0_4] : memref<16x32xf32, #tpu.memory_space<vmem>>, vector<16x32xf32>
    tpu.vector_store %arg3[%c0_3, %c0_4], %7 {strides = array<i32>} : memref<16x32xf32, #tpu.memory_space<vmem>>, vector<16x32xf32>,
    return
  }
  func.func @transform_0(%arg0: i32) -> (i32, i32) {
    %c0_i32 = arith.constant 0 : i32
    %c0_i32_0 = arith.constant 0 : i32
    return %arg0, %c0_i32 : i32, i32
  }
  func.func @transform_1(%arg0: i32) -> (i32, i32) {
    %c0_i32 = arith.constant 0 : i32
    %c0_i32_0 = arith.constant 0 : i32
    %c0_i32_1 = arith.constant 0 : i32
    return %c0_i32, %c0_i32_0 : i32, i32
  }
  func.func @transform_2(%arg0: i32) -> (i32, i32) {
    %c0_i32 = arith.constant 0 : i32
    %c0_i32_0 = arith.constant 0 : i32
    return %arg0, %c0_i32 : i32, i32
  }
}

</mosaic_0001>

<bundles_post_ra>
// kernel: tpu_custom_call.1
= control target key start
LH: loop header
LB: loop body
LE: loop exit
PB: predicated region body
PF: predicated region fallthrough
CT: control target
= control target key end

     0   :  { %v852_v2 = vmov 0   ;;  %s1085_s0 = inlined_call_operand.vmem [shape: s32[16,1], index: 0, kind: input, shape index: {}]   ;;  %s1086_s1 = inlined_call_operand.vmem [shape: f32[64,32], index: 1, kind: input, shape index: {}]   ;;  %s1087_s2 = inlined_call_operand.hbm [shape: f32[16,32], index: 2, kind: output, shape index: {}]  }
   0x1   :  { %v14_v0 = vld [vmem:[%s1085_s0] sm:$0xff]  ;;  %v35_v1 = vld [vmem:[%s1086_s1 + $0x38] sm:$0xff]  ;;  %829 = vset.pattern.permute.xlu0 %v852_v2  ;;  %v34_v4 = vld [vmem:[%s1086_s1 + $0x30] sm:$0xff] }
   0x2   :  { %v878_v3 = vand.u32 4294901760, %v35_v1  ;;  %v33_v5 = vld [vmem:[%s1086_s1 + $0x28] sm:$0xff]  ;;  %v32_v6 = vld [vmem:[%s1086_s1 + $0x20] sm:$0xff]  ;;  %17 = vperm.xlu0 %829, %v14_v0   ;;  %v892_v8 = vand.u32 4294901760, %v34_v4  ;;  %v31_v11 = vld [vmem:[%s1086_s1 + $0x18] sm:$0xff] }
   0x3   :  { %v15_v7 = vld [vmem:[%s1085_s0 + $0x8] sm:$0xff]  ;;  %v894_v9 = vand.u32 4294901760, %v33_v5  ;;  %v896_v10 = vand.u32 4294901760, %v32_v6  ;;  %v30_v12 = vld [vmem:[%s1086_s1 + $0x10] sm:$0xff]  ;;  %v907_v14 = vand.u32 4294901760, %v31_v11  ;;  %v28_v17 = vld [vmem:[%s1086_s1] sm:$0xff] }
   0x4   :  { %v905_v13 = vsub.f32 %v35_v1, %v878_v3  ;;  %710 = vmatprep.subr.mxu0 %v878_v3  ;;  %v910_v15 = vand.u32 4294901760, %v30_v12  ;;  %v29_v16 = vld [vmem:[%s1086_s1 + $0x8] sm:$0xff] }
   0x5   :  { %7 = vsyncpa [#allocation3], 0  ;;  %v919_v18 = vsub.f32 %v34_v4, %v892_v8  ;;  %v922_v19 = vsub.f32 %v33_v5, %v894_v9  ;;  %v925_v20 = vsub.f32 %v32_v6, %v896_v10  ;;  %711 = vmatpush3.msra.mxu0 %v878_v3  ;;  %v928_v21 = vand.u32 4294901760, %v29_v16  ;;  %s854_s1 = smov [#allocation2]  }
   0x6   :  { %v931_v22 = vand.u32 4294901760, %v905_v13  ;;  %v934_v23 = vsub.f32 %v31_v11, %v907_v14  ;;  %v937_v24 = vsub.f32 %v30_v12, %v910_v15  ;;  %712 = vmatprep.subr.mxu0 %v892_v8  ;;  %v940_v25 = vand.u32 4294901760, %v28_v17  ;;  %20 = vperm.xlu0 %829, %v15_v7   ;;  %s631_s28 = sshll.u32 %s854_s1, 4  ;;  %s632_s28 = int_to_ptr.vmem [resolvable:$true] %s631_s28 }
   0x7   :  { %v943_v26 = vand.u32 4294901760, %v919_v18  ;;  %v946_v27 = vand.u32 4294901760, %v922_v19  ;;  %v949_v28 = vand.u32 4294901760, %v925_v20  ;;  %713 = vmatpush3.msra.mxu0 %v892_v8  ;;  %v958_v31 = vsub.f32 %v29_v16, %v928_v21  ;;  %s830_s29 = scalar_lea.vmem %s632_s28, 256  ;;  %p835_p1 = scmp.lt.s32.totalorder %s632_s28, %s632_s28 }
   0x8   :  { %v156_v29 = vsub.f32 %v905_v13, %v931_v22  ;;  %v955_v30 = vand.u32 4294901760, %v934_v23  ;;  %714 = vmatprep.subr.mxu0 %v894_v9  ;;  %v969_v36 = vand.u32 4294901760, %v937_v24  ;;  %v972_v37 = vsub.f32 %v28_v17, %v940_v25  ;;  %p831_p0 = scmp.ne.s32.totalorder %s632_s28, %s830_s29  ;;  %p836_p2 = scmp.lt.s32.totalorder %s830_s29, %s830_s29 }
   0x9   :  { %v163_v32 = vsub.f32 %v919_v18, %v943_v26  ;;  %v170_v33 = vsub.f32 %v922_v19, %v946_v27  ;;  %715 = vmatpush3.msra.mxu0 %v894_v9  ;;  %v177_v35 = vsub.f32 %v925_v20, %v949_v28  ;;  %v979_v41 = vand.u32 4294901760, %v958_v31 }
   0xa   :  { %v157_v34 = vand.u32 4294901760, %v156_v29  ;;  %716 = vmatprep.subr.mxu0 %v896_v10  ;;  %v184_v40 = vsub.f32 %v934_v23, %v955_v30  ;;  %v191_v43 = vsub.f32 %v937_v24, %v969_v36  ;;  %v986_v44 = vand.u32 4294901760, %v972_v37  ;;  %p837_p3 = por %p836_p2, %p835_p1 }
   0xb   :  { %v164_v38 = vand.u32 4294901760, %v163_v32  ;;  %717 = vmatpush3.msra.mxu0 %v896_v10  ;;  %v171_v39 = vand.u32 4294901760, %v170_v33  ;;  %v178_v42 = vand.u32 4294901760, %v177_v35  ;;  %v198_v46 = vsub.f32 %v958_v31, %v979_v41 }
   0xc   :  { %729 = vmatprep.subr.mxu1 %v157_v34  ;;  %718 = vmatprep.subr.mxu0 %v907_v14  ;;  %v185_v45 = vand.u32 4294901760, %v184_v40  ;;  %v192_v47 = vand.u32 4294901760, %v191_v43  ;;  %v205_v48 = vsub.f32 %v972_v37, %v986_v44  ;;  %v12_v51 = vlaneseq  ;;  %p838_p4 = pnand %p837_p3, %p831_p0 }
   0xd   :  { %730 = vmatpush3.msra.mxu1 %v157_v34  ;;  %719 = vmatpush3.msra.mxu0 %v907_v14  ;;  %v199_v49 = vand.u32 4294901760, %v198_v46  ;;  %vm36_vm0 = vcmask 523264   ;;  %v853_v54 = vmov 0.0   ;;  %vm623_vm3 = vcmask 261120  }
   0xe   :  { %731 = vmatprep.subr.mxu1 %v164_v38  ;;  %720 = vmatprep.subr.mxu0 %v910_v15  ;;  %v206_v50 = vand.u32 4294901760, %v205_v48  ;;  %v13_v52 = vand.u32 127, %v12_v51 }
   0xf   :  { %732 = vmatpush3.msra.mxu1 %v164_v38  ;;  %721 = vmatpush3.msra.mxu0 %v910_v15 }
  0x10   :  { %733 = vmatprep.subr.mxu1 %v171_v39  ;;  %722 = vmatprep.subr.mxu0 %v928_v21 }
  0x11   :  { %734 = vmatpush3.msra.mxu1 %v171_v39  ;;  %723 = vmatpush3.msra.mxu0 %v928_v21 }
  0x12   :  { %735 = vmatprep.subr.mxu1 %v178_v42  ;;  %724 = vmatprep.subr.mxu0 %v940_v25 }
  0x13   :  { %736 = vmatpush3.msra.mxu1 %v178_v42  ;;  %725 = vmatpush3.msra.mxu0 %v940_v25 }
  0x14   :  { %737 = vmatprep.subr.mxu1 %v185_v45  ;;  %748 = vmatprep.subr.mxu0 %v905_v13 }
  0x15   :  { %738 = vmatpush3.msra.mxu1 %v185_v45 }
  0x16   :  { %739 = vmatprep.subr.mxu1 %v192_v47 }
  0x17   :  { %740 = vmatpush3.msra.mxu1 %v192_v47 }
  0x18   :  { %741 = vmatprep.subr.mxu1 %v199_v49 }
  0x19   :  { %742 = vmatpush3.msra.mxu1 %v199_v49 }
  0x1a   :  { %743 = vmatprep.subr.mxu1 %v206_v50 }
  0x1b   :  { %744 = vmatpush3.msra.mxu1 %v206_v50 }
  0x1c   :  { %767 = vmatprep.subr.mxu1 %v878_v3 }
  0x7d   :  { %v18_v53 = vpop.permute.xlu0 %17 }
  0x7e   :  { %vm22_vm1 = vcmp.eq.s32.totalorder %v13_v52, %v18_v53 }
  0x7f   :  { %v1000_v55 = vsel %vm22_vm1, 1.0, %v853_v54 }
  0x80   :  { %v38_v56 = vsel %vm36_vm0, %v1000_v55, 0  ;;  %745 = vmatprep.mubr.msk.f32.mxu1 %vm36_vm0, %v1000_v55 }
  0x81   :  { %v117_v57 = vsub.f32 %v38_v56, %v38_v56  ;;  %v21_v58 = vpop.permute.xlu0 %20 }
  0x82   :  { %vm23_vm2 = vcmp.eq.s32.totalorder %v13_v52, %v21_v58 }
  0x83   :  { %v1006_v59 = vsel %vm23_vm2, 1.0, %v853_v54  ;;  %v118_v60 = vand.u32 4294901760, %v117_v57 }
  0x84   :  { %v41_v61 = vsel %vm36_vm0, %v1006_v59, 0  ;;  %746 = vmatmul.mubr.msk.f32.vlgmr.msra.gmra.mxu1 %vm36_vm0, %v1006_v59 }
  0x85   :  { %v127_v62 = vsub.f32 %v41_v61, %v41_v61  ;;  %768 = vmatpush3.msra.mxu1 %v878_v3  ;;  %783 = vmatprep.mubr.f32.mxu1 %v118_v60  ;;  %v119_v63 = vsub.f32 %v117_v57, %v118_v60 }
  0x86   :  { %769 = vmatprep.subr.mxu1 %v892_v8 }
  0x87   :  { %770 = vmatpush3.msra.mxu1 %v892_v8  ;;  %v120_v0 = vand.u32 4294901760, %v119_v63  ;;  %v128_v1 = vand.u32 4294901760, %v127_v62 }
  0x88   :  { %771 = vmatprep.subr.mxu1 %v894_v9 }
  0x89   :  { %772 = vmatpush3.msra.mxu1 %v894_v9  ;;  %726 = vmatprep.mubr.f32.mxu0 %v120_v0  ;;  %v129_v2 = vsub.f32 %v127_v62, %v128_v1 }
  0x8a   :  { %773 = vmatprep.subr.mxu1 %v896_v10 }
  0x8b   :  { %774 = vmatpush3.msra.mxu1 %v896_v10  ;;  %v130_v4 = vand.u32 4294901760, %v129_v2 }
  0x8c   :  { %775 = vmatprep.subr.mxu1 %v907_v14 }
  0x8d   :  { %776 = vmatpush3.msra.mxu1 %v907_v14  ;;  %727 = vmatmul.mubr.f32.vlgmr.msra.gmra.mxu0 %v130_v4 }
  0x8e   :  { %749 = vmatpush3.msra.mxu0 %v905_v13  ;;  %777 = vmatprep.subr.mxu1 %v910_v15 }
  0x8f   :  { %750 = vmatprep.subr.mxu0 %v919_v18  ;;  %764 = vmatprep.mubr.f32.mxu0 %v117_v57 }
  0x90   :  { %778 = vmatpush3.msra.mxu1 %v910_v15  ;;  %751 = vmatpush3.msra.mxu0 %v919_v18 }
  0x91   :  { %779 = vmatprep.subr.mxu1 %v928_v21  ;;  %752 = vmatprep.subr.mxu0 %v922_v19 }
  0x92   :  { %780 = vmatpush3.msra.mxu1 %v928_v21  ;;  %753 = vmatpush3.msra.mxu0 %v922_v19 }
  0x93   :  { %781 = vmatprep.subr.mxu1 %v940_v25  ;;  %754 = vmatprep.subr.mxu0 %v925_v20 }
  0x94   :  { %782 = vmatpush3.msra.mxu1 %v940_v25  ;;  %755 = vmatpush3.msra.mxu0 %v925_v20 }
  0x95   :  { %784 = vmatmul.mubr.f32.vlgmr.msra.gmra.mxu1 %v128_v1  ;;  %805 = vmatprep.subr.mxu1 %v878_v3 }
  0x96   :  { %756 = vmatprep.subr.mxu0 %v934_v23  ;;  %806 = vmatpush3.msra.mxu1 %v878_v3 }
  0x97   :  { %821 = vmatprep.mubr.msk.f32.mxu1 %vm36_vm0, %v1000_v55  ;;  %757 = vmatpush3.msra.mxu0 %v934_v23 }
  0x98   :  { %807 = vmatprep.subr.mxu1 %v892_v8  ;;  %758 = vmatprep.subr.mxu0 %v937_v24 }
  0x99   :  { %808 = vmatpush3.msra.mxu1 %v892_v8  ;;  %759 = vmatpush3.msra.mxu0 %v937_v24 }
  0x9a   :  { %809 = vmatprep.subr.mxu1 %v894_v9  ;;  %760 = vmatprep.subr.mxu0 %v958_v31 }
  0x9b   :  { %810 = vmatpush3.msra.mxu1 %v894_v9  ;;  %761 = vmatpush3.msra.mxu0 %v958_v31 }
  0x9c   :  { %811 = vmatprep.subr.mxu1 %v896_v10  ;;  %762 = vmatprep.subr.mxu0 %v972_v37 }
  0x9d   :  { %812 = vmatpush3.msra.mxu1 %v896_v10  ;;  %763 = vmatpush3.msra.mxu0 %v972_v37 }
  0x9e   :  { %813 = vmatprep.subr.mxu1 %v907_v14  ;;  %765 = vmatmul.mubr.f32.vlgmr.msra.gmra.mxu0 %v127_v62 }
  0x9f   :  { %786 = vmatprep.subr.mxu0 %v931_v22  ;;  %814 = vmatpush3.msra.mxu1 %v907_v14 }
  0xa0   :  { %787 = vmatpush3.msra.mxu0 %v931_v22  ;;  %802 = vmatprep.mubr.msk.f32.mxu0 %vm36_vm0, %v1000_v55 }
  0xa1   :  { %815 = vmatprep.subr.mxu1 %v910_v15  ;;  %788 = vmatprep.subr.mxu0 %v943_v26 }
  0xa2   :  { %816 = vmatpush3.msra.mxu1 %v910_v15  ;;  %789 = vmatpush3.msra.mxu0 %v943_v26 }
  0xa3   :  { %817 = vmatprep.subr.mxu1 %v928_v21  ;;  %790 = vmatprep.subr.mxu0 %v946_v27 }
  0xa4   :  { %818 = vmatpush3.msra.mxu1 %v928_v21  ;;  %791 = vmatpush3.msra.mxu0 %v946_v27 }
  0xa5   :  { %819 = vmatprep.subr.mxu1 %v940_v25  ;;  %792 = vmatprep.subr.mxu0 %v949_v28 }
  0xa6   :  { %820 = vmatpush3.msra.mxu1 %v940_v25  ;;  %793 = vmatpush3.msra.mxu0 %v949_v28 }
  0xa7   :  { %822 = vmatmul.mubr.msk.f32.vlgmr.msra.gmra.mxu1 %vm36_vm0, %v1006_v59  ;;  %794 = vmatprep.subr.mxu0 %v955_v30 }
  0xa8   :  { %795 = vmatpush3.msra.mxu0 %v955_v30 }
  0xa9   :  { %796 = vmatprep.subr.mxu0 %v969_v36 }
  0xaa   :  { %797 = vmatpush3.msra.mxu0 %v969_v36 }
  0xab   :  { %798 = vmatprep.subr.mxu0 %v979_v41 }
  0xac   :  { %799 = vmatpush3.msra.mxu0 %v979_v41 }
  0xad   :  { %800 = vmatprep.subr.mxu0 %v986_v44 }
  0xae   :  { %801 = vmatpush3.msra.mxu0 %v986_v44 }
  0xaf   :  { %803 = vmatmul.mubr.msk.f32.vlgmr.msra.gmra.mxu0 %vm36_vm0, %v1006_v59 }
 0x144   :  { %v747_v5 = vpop.f32.mrf.mxu1 }
 0x146   :  { %v243_v8 = vpop.f32.mrf.mxu1 }
 0x14d   :  { %v728_v3 = vpop.f32.mrf.mxu0 }
 0x14e   :  { %v250_v9 = vadd.f32 %v747_v5, %v728_v3 }
 0x14f   :  { %v122_v6 = vpop.f32.mrf.mxu0 }
 0x150   :  { %v244_v12 = vadd.f32 %v243_v8, %v122_v6 }
 0x155   :  { %v785_v10 = vpop.f32.mrf.mxu1 }
 0x157   :  { %v425_v15 = vpop.f32.mrf.mxu1 }
 0x15e   :  { %v766_v7 = vpop.f32.mrf.mxu0 }
 0x15f   :  { %v345_v13 = vadd.f32 %v766_v7, %v250_v9 }
 0x160   :  { %v337_v11 = vpop.f32.mrf.mxu0 }
 0x161   :  { %v338_v14 = vadd.f32 %v337_v11, %v244_v12  ;;  %v434_v16 = vadd.f32 %v785_v10, %v345_v13 }
 0x163   :  { %v426_v20 = vadd.f32 %v425_v15, %v338_v14 }
 0x167   :  { %v823_v17 = vpop.f32.mrf.mxu1 }
 0x169   :  { %v613_v24 = vpop.f32.mrf.mxu1 }
 0x16f   :  { %v804_v18 = vpop.f32.mrf.mxu0 }
 0x170   :  { %v535_v19 = vadd.f32 %v804_v18, %v434_v16 }
 0x171   :  { %v528_v21 = vpop.f32.mrf.mxu0 }
 0x172   :  { %v620_v22 = vadd.f32 %v823_v17, %v535_v19  ;;  %v529_v23 = vadd.f32 %v528_v21, %v426_v20 }
 0x174   :  { %625 = vst.msk [vmem:[#allocation2 + $0x8] sm:$0xff] %vm623_vm3, %v620_v22  ;;  %v614_v25 = vadd.f32 %v613_v24, %v529_v23 }
 0x176   :  { %624 = vst.msk [vmem:[#allocation2] sm:$0xff] %vm623_vm3, %v614_v25 }
 0x177   :  { %841 = shalt.err (!%p838_p4)
}
 0x178   :  { %s855_s30 = smov 128   ;;  %s856_s3 = smov 8  }
 0x179   :  { %637 = dma.vmem_to_hbm [thread:$0]  %s632_s28, 256, %s1087_s2, [#allocation3], %s855_s30, %s855_s30, %s856_s3  }
 0x17a   :  { %850 = dma.done.wait [#allocation3], 256  }
 0x17b   :  { %851 = vsyncadd [#allocation3], 4294967040 }
 0x17c   :  { %641 = vsyncpa [#allocation3], 1 }

</bundles_post_ra>
